<compile_context>
chip_gen: v5e
topology: v5e:2x2
jax: 0.10.0
libtpu: 0.0.40
codegen_flags: <defaults>
</compile_context>

<pallas_src>
import math

import jax
import jax.numpy as jnp
from jax.experimental import pallas as pl
from jax.experimental.pallas import tpu as pltpu


def _round_up(x, m):
    return ((x + m - 1) // m) * m


def _cos_distance_kernel(x_ref, w_ref, inv_ref, o_ref, acc_ref):
    """One (tm, tn) output tile; grid axis 2 reduces over D_in (K)."""
    k = pl.program_id(2)

    @pl.when(k == 0)
    def _init():
        acc_ref[...] = jnp.zeros_like(acc_ref)

    # Pure MXU work in the steady state; f32 accumulation in VMEM scratch.
    acc_ref[...] += jnp.dot(x_ref[...], w_ref[...],
                            preferred_element_type=jnp.float32)

    @pl.when(k == pl.num_programs(2) - 1)
    def _finalize():
        # (tm, tn) * (1, tn) broadcast scale by the precomputed inverse norm.
        o_ref[...] = (acc_ref[...] * inv_ref[...]).astype(o_ref.dtype)


def cos_distance(x, weight, *, tm=256, tn=512, tk=1024, mxu_dtype=None):
    """x: (B, in_features), weight: (in_features, out_features).

    Returns x @ (weight / ||weight||_col), matching the PyTorch module.
    """
    B, D_in = x.shape
    D_in_w, D_out = weight.shape
    assert D_in == D_in_w, (D_in, D_in_w)

    out_dtype = x.dtype

    # --- Hoisted out of the kernel's K loop: per-column inverse L2 norm. ---
    # Computed in f32 regardless of input dtype.  An all-zero column gives
    # inf here and NaN output, matching PyTorch's W/0 behavior.
    w32 = weight.astype(jnp.float32)
    inv_norm = 1.0 / jnp.sqrt(jnp.sum(w32 * w32, axis=0, keepdims=True))  # (1, D_out)

    if mxu_dtype is not None:
        x = x.astype(mxu_dtype)
        weight = weight.astype(mxu_dtype)

    # --- Tile selection (clamped to small problems, alignment-safe). ---
    # tm: sublane-aligned (8); tn: lane-aligned (128) so output stores are
    # unmasked; tk: 8-aligned (it is either a multiple of 128 or the full,
    # padded K extent, satisfying the (8,128) BlockSpec rule).
    tm = min(tm, _round_up(B, 8))
    tn = min(tn, _round_up(D_out, 128))
    tk = min(tk, _round_up(D_in, 8))

    B_pad = _round_up(B, tm)
    N_pad = _round_up(D_out, tn)
    K_pad = _round_up(D_in, tk)

    if (B_pad, K_pad) != (B, D_in):
        x = jnp.pad(x, ((0, B_pad - B), (0, K_pad - D_in)))
    if (K_pad, N_pad) != (D_in, D_out):
        weight = jnp.pad(weight, ((0, K_pad - D_in), (0, N_pad - D_out)))
    if N_pad != D_out:
        # Padded (all-zero) columns get a norm of 1.0 so they stay finite;
        # they are sliced off below anyway.
        inv_norm = jnp.pad(inv_norm, ((0, 0), (0, N_pad - D_out)),
                           constant_values=1.0)

    grid = (B_pad // tm, N_pad // tn, K_pad // tk)

    # Advisory cost + VMEM budget derived from the chosen tiles.
    x_bytes = jnp.dtype(x.dtype).itemsize
    w_bytes = jnp.dtype(weight.dtype).itemsize
    o_bytes = jnp.dtype(out_dtype).itemsize
    flops = 2 * B_pad * K_pad * N_pad
    bytes_accessed = (B_pad * K_pad * x_bytes * (N_pad // tn)
                      + K_pad * N_pad * w_bytes * (B_pad // tm)
                      + N_pad * 4
                      + B_pad * N_pad * o_bytes)
    cost = pl.CostEstimate(flops=int(flops), transcendentals=0,
                           bytes_accessed=int(bytes_accessed))

    vmem_est = (2 * (tm * tk * x_bytes + tk * tn * w_bytes + tn * 4)
                + 2 * tm * tn * o_bytes
                + tm * tn * 4)
    vmem_limit = int(min(max(int(vmem_est * 1.5), 32 * 1024 * 1024),
                         64 * 1024 * 1024))

    out = pl.pallas_call(
        _cos_distance_kernel,
        out_shape=jax.ShapeDtypeStruct((B_pad, N_pad), out_dtype),
        grid_spec=pltpu.PrefetchScalarGridSpec(
            num_scalar_prefetch=0,
            grid=grid,
            in_specs=[
                pl.BlockSpec((tm, tk), lambda i, j, k: (i, k)),   # X tile
                pl.BlockSpec((tk, tn), lambda i, j, k: (k, j)),   # W tile
                pl.BlockSpec((1, tn), lambda i, j, k: (0, j)),    # inv col norm
            ],
            out_specs=pl.BlockSpec((tm, tn), lambda i, j, k: (i, j)),
            scratch_shapes=[
                pltpu.VMEM((tm, tn), jnp.float32),  # f32 matmul accumulator
            ],
        ),
        compiler_params=pltpu.CompilerParams(
            # Batch / D_out tiles are independent (megacore-shardable); the
            # D_in axis is the reduction and must stay sequential + innermost.
            dimension_semantics=("parallel", "parallel", "arbitrary"),
            vmem_limit_bytes=vmem_limit,
        ),
        cost_estimate=cost,
    )(x, weight, inv_norm)

    if (B_pad, N_pad) != (B, D_out):
        out = out[:B, :D_out]
    return out


if __name__ == "__main__":
    # Small shapes consistent with the module: X (batch, input_features),
    # weight (input_features, output_features).
    batch = 8
    input_features = 32
    output_features = 128

    key = jax.random.PRNGKey(0)
    kx, kw = jax.random.split(key)

    x = jax.random.normal(kx, (batch, input_features), dtype=jnp.float32)
    # nn.init.normal_(weight, std=sqrt(1/input_features)), deterministic here.
    weight = (
        jax.random.normal(kw, (input_features, output_features), dtype=jnp.float32)
        * math.sqrt(1.0 / input_features)
    )

    out = jax.block_until_ready(cos_distance(x, weight))

    # Reference check in plain JAX (same semantics as the PyTorch forward).
    w_norm = jnp.linalg.norm(weight, ord=2, axis=0)
    ref = x @ (weight / w_norm[None, :])
    assert out.shape == (batch, output_features)
    assert jnp.allclose(out, ref, atol=1e-5, rtol=1e-5)

    # Ragged / non-divisible shapes exercise the padding + slicing path.
    x2 = jax.random.normal(kx, (5, 20), dtype=jnp.float32)
    w2 = (jax.random.normal(kw, (20, 100), dtype=jnp.float32)
          * math.sqrt(1.0 / 20))
    out2 = jax.block_until_ready(cos_distance(x2, w2))
    ref2 = x2 @ (w2 / jnp.linalg.norm(w2, ord=2, axis=0)[None, :])
    assert out2.shape == (5, 100)
    assert jnp.allclose(out2, ref2, atol=1e-5, rtol=1e-5)

    print("KERNEL_OK")
</pallas_src>

<mosaic_0001>
module attributes {stable_mosaic.version = 11 : i64} {
  func.func @_cos_distance_kernel(%arg0: i32, %arg1: i32, %arg2: i32, %arg3: memref<8x32xf32, #tpu.memory_space<vmem>>, %arg4: memref<32x128xf32, #tpu.memory_space<vmem>>, %arg5: memref<1x128xf32, #tpu.memory_space<vmem>>, %arg6: memref<8x128xf32, #tpu.memory_space<vmem>>, %arg7: memref<8x128xf32, #tpu.memory_space<vmem>>) attributes {dimension_semantics = [#tpu.dimension_semantics<parallel>, #tpu.dimension_semantics<parallel>, #tpu.dimension_semantics<arbitrary>], iteration_bounds = array<i64: 1, 1, 1>, scalar_prefetch = 0 : i64, scratch_operands = 1 : i64, tpu.core_type = #tpu.core_type<tc>, window_params = [{transform_indices = @transform_0, window_bounds = array<i64: 8, 32>}, {transform_indices = @transform_1, window_bounds = array<i64: 32, 128>}, {transform_indices = @transform_2, window_bounds = array<i64: 1, 128>}, {transform_indices = @transform_3, window_bounds = array<i64: 8, 128>}]} {
    %c0_i32 = arith.constant 0 : i32
    %0 = arith.cmpi eq, %arg2, %c0_i32 : i32
    %1 = arith.extui %0 : i1 to i32
    %c0_i32_0 = arith.constant 0 : i32
    %2 = arith.cmpi ne, %1, %c0_i32_0 : i32
    scf.if %2 {
      %cst_10 = arith.constant 0.000000e+00 : f32
      %12 = vector.broadcast %cst_10 : f32 to vector<8x128xf32>
      %c0_11 = arith.constant 0 : index
      %c0_12 = arith.constant 0 : index
      %13 = vector.load %arg7[%c0_11, %c0_12] : memref<8x128xf32, #tpu.memory_space<vmem>>, vector<8x128xf32>
      tpu.vector_store %arg7[%c0_11, %c0_12], %12 {strides = array<i32>} : memref<8x128xf32, #tpu.memory_space<vmem>>, vector<8x128xf32>,
    } else {
    }
    %c0 = arith.constant 0 : index
    %c0_1 = arith.constant 0 : index
    %3 = vector.load %arg7[%c0, %c0_1] : memref<8x128xf32, #tpu.memory_space<vmem>>, vector<8x128xf32>
    %c0_2 = arith.constant 0 : index
    %c0_3 = arith.constant 0 : index
    %4 = vector.load %arg3[%c0_2, %c0_3] : memref<8x32xf32, #tpu.memory_space<vmem>>, vector<8x32xf32>
    %c0_4 = arith.constant 0 : index
    %c0_5 = arith.constant 0 : index
    %5 = vector.load %arg4[%c0_4, %c0_5] : memref<32x128xf32, #tpu.memory_space<vmem>>, vector<32x128xf32>
    %cst = arith.constant dense<0.000000e+00> : vector<8x128xf32>
    %6 = tpu.matmul %4, %5, %cst {dimension_numbers = #tpu.dot_dimension_numbers<[1], [0], [0], [1], [0, 0, 1, 1], [], []>} : vector<8x32xf32>, vector<32x128xf32>, vector<8x128xf32> -> vector<8x128xf32>
    %7 = arith.addf %3, %6 : vector<8x128xf32>
    %c0_6 = arith.constant 0 : index
    %c0_7 = arith.constant 0 : index
    %8 = vector.load %arg7[%c0_6, %c0_7] : memref<8x128xf32, #tpu.memory_space<vmem>>, vector<8x128xf32>
    tpu.vector_store %arg7[%c0_6, %c0_7], %7 {strides = array<i32>} : memref<8x128xf32, #tpu.memory_space<vmem>>, vector<8x128xf32>,
    %c0_i32_8 = arith.constant 0 : i32
    %9 = arith.cmpi eq, %arg2, %c0_i32_8 : i32
    %10 = arith.extui %9 : i1 to i32
    %c0_i32_9 = arith.constant 0 : i32
    %11 = arith.cmpi ne, %10, %c0_i32_9 : i32
    scf.if %11 {
      %c0_10 = arith.constant 0 : index
      %c0_11 = arith.constant 0 : index
      %12 = vector.load %arg7[%c0_10, %c0_11] : memref<8x128xf32, #tpu.memory_space<vmem>>, vector<8x128xf32>
      %c0_12 = arith.constant 0 : index
      %c0_13 = arith.constant 0 : index
      %13 = vector.load %arg5[%c0_12, %c0_13] : memref<1x128xf32, #tpu.memory_space<vmem>>, vector<1x128xf32>
      %14 = vector.broadcast %13 : vector<1x128xf32> to vector<8x128xf32>
      %15 = arith.mulf %12, %14 : vector<8x128xf32>
      %c0_14 = arith.constant 0 : index
      %c0_15 = arith.constant 0 : index
      %16 = vector.load %arg6[%c0_14, %c0_15] : memref<8x128xf32, #tpu.memory_space<vmem>>, vector<8x128xf32>
      tpu.vector_store %arg6[%c0_14, %c0_15], %15 {strides = array<i32>} : memref<8x128xf32, #tpu.memory_space<vmem>>, vector<8x128xf32>,
    } else {
    }
    return
  }
  func.func @transform_0(%arg0: i32, %arg1: i32, %arg2: i32) -> (i32, i32) {
    %c0_i32 = arith.constant 0 : i32
    return %arg0, %arg2 : i32, i32
  }
  func.func @transform_1(%arg0: i32, %arg1: i32, %arg2: i32) -> (i32, i32) {
    %c0_i32 = arith.constant 0 : i32
    return %arg2, %arg1 : i32, i32
  }
  func.func @transform_2(%arg0: i32, %arg1: i32, %arg2: i32) -> (i32, i32) {
    %c0_i32 = arith.constant 0 : i32
    %c0_i32_0 = arith.constant 0 : i32
    return %c0_i32, %arg1 : i32, i32
  }
  func.func @transform_3(%arg0: i32, %arg1: i32, %arg2: i32) -> (i32, i32) {
    %c0_i32 = arith.constant 0 : i32
    return %arg0, %arg1 : i32, i32
  }
}

</mosaic_0001>

<bundles_post_ra>
// kernel: tpu_custom_call.1
= control target key start
LH: loop header
LB: loop body
LE: loop exit
PB: predicated region body
PF: predicated region fallthrough
CT: control target
= control target key end

     0   :  { %8 = vsyncpa [#allocation4], 0  ;;  %s232_s0 = inlined_call_operand.hbm [shape: f32[8,32], index: 0, kind: input, shape index: {}]   ;;  %s233_s1 = inlined_call_operand.hbm [shape: f32[32,128], index: 1, kind: input, shape index: {}]   ;;  %s234_s2 = inlined_call_operand.vmem [shape: f32[1,128], index: 2, kind: input, shape index: {}]   ;;  %s235_s3 = inlined_call_operand.hbm [shape: f32[8,128], index: 3, kind: output, shape index: {}]  }
   0x1   :  { %9 = vsyncpa [#allocation7], 0 }
   0x2   :  { %10 = vsyncpa [#allocation5], 0  ;;  %s16_s14 = sshll.u32 %s232_s0, 4  ;;  %s195_s15 = smov [#allocation3]   ;;  %s17_s14 = int_to_ptr.hbm [resolvable:$true] %s16_s14 }
   0x3   :  { %s18_s16 = sshll.u32 %s195_s15, 4  ;;  %s26_s19 = sshll.u32 %s233_s1, 4  ;;  %s19_s16 = int_to_ptr.vmem [resolvable:$true] %s18_s16  ;;  %s27_s19 = int_to_ptr.hbm [resolvable:$true] %s26_s19 }
   0x4   :  { %21 = dma.hbm_to_vmem [thread:$0]  %s17_s14, 128, %s19_s16, [#allocation4]  }
   0x5   :  { %s196_s20 = smov [#allocation6]   ;;  %s197_s22 = smov 128  }
   0x6   :  { %s28_s21 = sshll.u32 %s196_s20, 4  ;;  %s198_s23 = smov 8   ;;  %s29_s21 = int_to_ptr.vmem [resolvable:$true] %s28_s21 }
   0x7   :  { %34 = dma.hbm_to_vmem [thread:$0]  %s27_s19, 512, %s29_s21, [#allocation7], %s197_s22, %s197_s22, %s198_s23  }
   0x8   :  { %189 = dma.done.wait [#allocation4], 128  }
   0x9   :  { %190 = vsyncadd [#allocation4], 4294967168 }
   0xa   :  { %191 = dma.done.wait [#allocation7], 512  }
   0xb   :  { %192 = vsyncadd [#allocation7], 4294966784  ;;  %v55_v0 = vld [vmem:[#allocation6 + $0x18] sm:$0xff]  ;;  %v54_v1 = vld [vmem:[#allocation6 + $0x10] sm:$0xff]  ;;  %vm56_vm0 = vcmask 261120   ;;  %s199_s24 = smov [#allocation8]  }
   0xc   :  { %72 = vmatpush.msra.mxu0 %v55_v0  ;;  %v53_v2 = vld [vmem:[#allocation6 + $0x8] sm:$0xff]  ;;  %v52_v3 = vld [vmem:[#allocation6] sm:$0xff]  ;;  %v51_v4 = vld [vmem:[#allocation3] sm:$0xff]  ;;  %s97_s25 = sshll.u32 %s199_s24, 4  ;;  %s99_s28 = sshll.u32 %s235_s3, 4  ;;  %s98_s25 = int_to_ptr.vmem [resolvable:$true] %s97_s25  ;;  %s100_s28 = int_to_ptr.hbm [resolvable:$true] %s99_s28 }
   0xd   :  { %v116_v5 = vld [vmem:[%s234_s2] ss:$0 sm:$0xff] }
   0xe   :  { %73 = vmatpush.msra.mxu0 %v54_v1 }
  0x10   :  { %74 = vmatpush.msra.mxu0 %v53_v2 }
  0x12   :  { %75 = vmatpush.msra.mxu0 %v52_v3 }
  0x13   :  { %110 = vmatmul.msk.f32.vlgmr.msra.gmra.mxu0 %vm56_vm0, %v51_v4 }
  0x90   :  { %v77_v6 = vpop.f32.mrf.mxu0 }
  0x91   :  { %v90_v7 = vmul.f32 %v116_v5, %v77_v6 }
  0x93   :  { %91 = vst [vmem:[#allocation8] sm:$0xff] %v90_v7 }
  0x94   :  { %102 = dma.vmem_to_hbm [thread:$0]  %s98_s25, 128, %s100_s28, [#allocation5]  }
  0x95   :  { %193 = dma.done.wait [#allocation5], 128  }
  0x96   :  { %194 = vsyncadd [#allocation5], 4294967168 }
  0x97   :  { %107 = vsyncpa [#allocation4], 1 }
  0x98   :  { %108 = vsyncpa [#allocation7], 1 }
  0x99   :  { %109 = vsyncpa [#allocation5], 1 }

</bundles_post_ra>
